<compile_context>
chip_gen: v7x
topology: tpu7x:2x2x1
jax: 0.10.0
libtpu: 0.0.40
codegen_flags: <defaults>
</compile_context>

<pallas_src>
import jax
import jax.numpy as jnp
from jax import lax
from jax.experimental import pallas as pl
from jax.experimental.pallas import tpu as pltpu


def _round_up(x, m):
    return (x + m - 1) // m * m


def alarmnet_kernel(x_ref,
                    w1_ref, b1_ref,
                    w2_ref, b2_ref,
                    w3_ref, b3_ref,
                    w4t_ref, b4_ref,
                    o_ref):
    """Fused MLP forward for one batch tile; all operands resident in VMEM.

    x / W are bf16 (MXU-native); accumulation, bias add and ReLU are f32.
    """
    h = x_ref[...]                                               # (tb, F) bf16
    h = jnp.maximum(
        jnp.dot(h, w1_ref[...], preferred_element_type=jnp.float32) + b1_ref[...],
        0.0).astype(jnp.bfloat16)                                # (tb, 64)
    h = jnp.maximum(
        jnp.dot(h, w2_ref[...], preferred_element_type=jnp.float32) + b2_ref[...],
        0.0).astype(jnp.bfloat16)                                # (tb, 32)
    h = jnp.maximum(
        jnp.dot(h, w3_ref[...], preferred_element_type=jnp.float32) + b3_ref[...],
        0.0).astype(jnp.bfloat16)                                # (tb, 16)
    # Final 16 -> 1 layer, computed transposed so the batch lands on the 128-lane
    # axis: contract w4t (1,16) with h (tb,16) along the 16-dim -> (1, tb).
    # Lane-dense store, no materialized f32 transpose of the (tb,16) activation.
    out_t = lax.dot_general(
        w4t_ref[...], h,
        dimension_numbers=(((1,), (1,)), ((), ())),
        preferred_element_type=jnp.float32) + b4_ref[...]
    o_ref[...] = out_t.astype(o_ref.dtype)


def _choose_batch_tile(num_features, vmem_budget_bytes, max_tile):
    """Largest 128-aligned batch tile whose pipeline footprint fits the budget."""
    f_pad = _round_up(max(num_features, 1), 128)
    # Per-row VMEM bytes (lane-padded):
    #   x tile, bf16, double-buffered ................. 2 * f_pad * 2
    #   live f32 activations (64/32/16 pad to 128 ln).. ~4 * 128 * 4
    #   bf16 re-casts of activations .................. ~2 * 128 * 2
    #   output row, f32, double-buffered .............. 2 * 4
    per_row = 2 * f_pad * 2 + 4 * 128 * 4 + 2 * 128 * 2 + 8
    tb = max(128, (vmem_budget_bytes // per_row) // 128 * 128)
    return min(tb, max_tile)


def alarmnet_forward(x, params, *,
                     vmem_budget_bytes=20 << 20,
                     max_batch_tile=8192):
    """x: [B, F] float32.  params: list of (W[in,out], b[1,out]) per layer."""
    B, F = x.shape
    (w1, b1), (w2, b2), (w3, b3), (w4, b4) = params
    w4t = w4.T  # (1, 16): final-layer weight as a row for the lane-dense matmul.

    # bf16 inputs / weights; biases stay f32 (bias + ReLU are f32 in-kernel).
    x_bf = x.astype(jnp.bfloat16)
    w1, w2, w3, w4t = (w.astype(jnp.bfloat16) for w in (w1, w2, w3, w4t))

    # ---- batch-tile selection (VMEM-budget-driven) --------------------------
    # TODO(synk): for very large num_features, add a K ("arbitrary") grid axis with a
    # VMEM f32 accumulator for layer 1 instead of letting the budget shrink the tile.
    tb_budget = _choose_batch_tile(F, vmem_budget_bytes, max_batch_tile)
    if B <= tb_budget:
        if B > 256:
            # Keep >= 2 grid steps so v7x's second TensorCore has work.
            tb = min(tb_budget, _round_up(-(-B // 2), 128))
        else:
            tb = _round_up(max(B, 1), 8)      # single small tile (full extent)
    else:
        tb = tb_budget                         # multiple of 128 by construction
    b_pad = _round_up(B, tb)
    num_tiles = b_pad // tb
    if b_pad != B:
        x_bf = jnp.pad(x_bf, ((0, b_pad - B), (0, 0)))

    def resident(a):
        # Whole array, same block index every grid step -> stays in VMEM.
        return pl.BlockSpec(a.shape, lambda i: (0,) * a.ndim)

    flops = 2 * B * (F * 64 + 64 * 32 + 32 * 16 + 16 * 1)
    bytes_accessed = (B * F * 2 + B * 4
                      + (F * 64 + 64 * 32 + 32 * 16 + 16) * 2
                      + (64 + 32 + 16 + 1) * 4)

    out = pl.pallas_call(
        alarmnet_kernel,
        out_shape=jax.ShapeDtypeStruct((1, b_pad), jnp.float32),
        grid_spec=pl.GridSpec(
            grid=(num_tiles,),
            in_specs=[
                pl.BlockSpec((tb, F), lambda i: (i, 0)),   # batch tile of x
                resident(w1), resident(b1),
                resident(w2), resident(b2),
                resident(w3), resident(b3),
                resident(w4t), resident(b4),
            ],
            out_specs=pl.BlockSpec((1, tb), lambda i: (0, i)),
        ),
        compiler_params=pltpu.CompilerParams(
            dimension_semantics=("parallel",),
            vmem_limit_bytes=32 << 20),
        cost_estimate=pl.CostEstimate(
            flops=flops, transcendentals=0, bytes_accessed=bytes_accessed),
    )(x_bf, w1, b1, w2, b2, w3, b3, w4t, b4)

    return out[0, :B].reshape(B, 1)


def init_params(key, num_features, hidden_layers=(64, 32, 16)):
    """Mimics torch.nn.Linear default init U(-1/sqrt(in), 1/sqrt(in)); W stored [in,out]."""
    dims = [num_features] + list(hidden_layers) + [1]
    params = []
    for i in range(len(dims) - 1):
        fan_in, fan_out = dims[i], dims[i + 1]
        key, kw, kb = jax.random.split(key, 3)
        bound = 1.0 / (fan_in ** 0.5)
        W = jax.random.uniform(kw, (fan_in, fan_out), jnp.float32, -bound, bound)
        b = jax.random.uniform(kb, (1, fan_out), jnp.float32, -bound, bound)
        params.append((W, b))
    return params


def reference_forward(x, params):
    h = x
    for i, (W, b) in enumerate(params):
        h = h @ W + b
        if i < len(params) - 1:
            h = jnp.maximum(h, 0.0)
    return h


# TODO(synk): training loop / sigmoid+round prediction / sklearn metrics from the
# PyTorch class are host-side utilities and are not implemented as kernels.

if __name__ == "__main__":
    key = jax.random.PRNGKey(0)

    # Small primary test (module defaults: hidden_layers=[64, 32, 16]).
    batch, num_features = 8, 32
    kx, kp, kx2 = jax.random.split(key, 3)
    x = jax.random.normal(kx, (batch, num_features), jnp.float32)
    params = init_params(kp, num_features, hidden_layers=(64, 32, 16))

    out = jax.block_until_ready(alarmnet_forward(x, params))
    ref = reference_forward(x, params)
    assert out.shape == (batch, 1)
    # bf16 inputs/weights (f32 accumulation): relaxed tolerance vs the f32 reference.
    assert jnp.allclose(out, ref, atol=5e-2, rtol=5e-2), "mismatch vs reference (small)"

    # Multi-tile test: exercises batch tiling (>= 2 grid steps for v7x), padding
    # and the VMEM-resident weight specs.
    batch2 = 300
    x2 = jax.random.normal(kx2, (batch2, num_features), jnp.float32)
    out2 = jax.block_until_ready(alarmnet_forward(x2, params))
    ref2 = reference_forward(x2, params)
    assert out2.shape == (batch2, 1)
    assert jnp.allclose(out2, ref2, atol=5e-2, rtol=5e-2), "mismatch vs reference (2-tile)"

    # Forced-small-tile test (3 grid steps) to exercise the budget-cap path.
    out3 = jax.block_until_ready(alarmnet_forward(x2, params, max_batch_tile=128))
    assert out3.shape == (batch2, 1)
    assert jnp.allclose(out3, ref2, atol=5e-2, rtol=5e-2), "mismatch vs reference (128 tile)"

    print("KERNEL_OK")
</pallas_src>

<mosaic_0001>
module attributes {stable_mosaic.version = 11 : i64} {
  func.func @alarmnet_kernel(%arg0: i32, %arg1: memref<8x32xbf16, #tpu.memory_space<vmem>>, %arg2: memref<32x64xbf16, #tpu.memory_space<vmem>>, %arg3: memref<1x64xf32, #tpu.memory_space<vmem>>, %arg4: memref<64x32xbf16, #tpu.memory_space<vmem>>, %arg5: memref<1x32xf32, #tpu.memory_space<vmem>>, %arg6: memref<32x16xbf16, #tpu.memory_space<vmem>>, %arg7: memref<1x16xf32, #tpu.memory_space<vmem>>, %arg8: memref<1x16xbf16, #tpu.memory_space<vmem>>, %arg9: memref<1x1xf32, #tpu.memory_space<vmem>>, %arg10: memref<1x8xf32, #tpu.memory_space<vmem>>) attributes {dimension_semantics = [#tpu.dimension_semantics<parallel>], iteration_bounds = array<i64: 1>, scalar_prefetch = 0 : i64, scratch_operands = 0 : i64, tpu.core_type = #tpu.core_type<tc>, window_params = [{transform_indices = @transform_0, window_bounds = array<i64: 8, 32>}, {pipeline_mode = #tpu.pipeline_mode<synchronous>, transform_indices = @transform_1, window_bounds = array<i64: 32, 64>}, {pipeline_mode = #tpu.pipeline_mode<synchronous>, transform_indices = @transform_2, window_bounds = array<i64: 1, 64>}, {pipeline_mode = #tpu.pipeline_mode<synchronous>, transform_indices = @transform_3, window_bounds = array<i64: 64, 32>}, {pipeline_mode = #tpu.pipeline_mode<synchronous>, transform_indices = @transform_4, window_bounds = array<i64: 1, 32>}, {pipeline_mode = #tpu.pipeline_mode<synchronous>, transform_indices = @transform_5, window_bounds = array<i64: 32, 16>}, {pipeline_mode = #tpu.pipeline_mode<synchronous>, transform_indices = @transform_6, window_bounds = array<i64: 1, 16>}, {pipeline_mode = #tpu.pipeline_mode<synchronous>, transform_indices = @transform_7, window_bounds = array<i64: 1, 16>}, {pipeline_mode = #tpu.pipeline_mode<synchronous>, transform_indices = @transform_8, window_bounds = array<i64: 1, 1>}, {transform_indices = @transform_9, window_bounds = array<i64: 1, 8>}]} {
    %c0 = arith.constant 0 : index
    %c0_0 = arith.constant 0 : index
    %0 = vector.load %arg1[%c0, %c0_0] : memref<8x32xbf16, #tpu.memory_space<vmem>>, vector<8x32xbf16>
    %c0_1 = arith.constant 0 : index
    %c0_2 = arith.constant 0 : index
    %1 = vector.load %arg2[%c0_1, %c0_2] : memref<32x64xbf16, #tpu.memory_space<vmem>>, vector<32x64xbf16>
    %cst = arith.constant dense<0.000000e+00> : vector<8x64xf32>
    %2 = tpu.matmul %0, %1, %cst {dimension_numbers = #tpu.dot_dimension_numbers<[1], [0], [0], [1], [0, 0, 1, 1], [], []>} : vector<8x32xbf16>, vector<32x64xbf16>, vector<8x64xf32> -> vector<8x64xf32>
    %c0_3 = arith.constant 0 : index
    %c0_4 = arith.constant 0 : index
    %3 = vector.load %arg3[%c0_3, %c0_4] : memref<1x64xf32, #tpu.memory_space<vmem>>, vector<1x64xf32>
    %4 = vector.broadcast %3 : vector<1x64xf32> to vector<8x64xf32>
    %5 = arith.addf %2, %4 : vector<8x64xf32>
    %cst_5 = arith.constant 0.000000e+00 : f32
    %6 = vector.broadcast %cst_5 : f32 to vector<8x64xf32>
    %7 = arith.maximumf %5, %6 : vector<8x64xf32>
    %8 = arith.truncf %7 : vector<8x64xf32> to vector<8x64xbf16>
    %c0_6 = arith.constant 0 : index
    %c0_7 = arith.constant 0 : index
    %9 = vector.load %arg4[%c0_6, %c0_7] : memref<64x32xbf16, #tpu.memory_space<vmem>>, vector<64x32xbf16>
    %cst_8 = arith.constant dense<0.000000e+00> : vector<8x32xf32>
    %10 = tpu.matmul %8, %9, %cst_8 {dimension_numbers = #tpu.dot_dimension_numbers<[1], [0], [0], [1], [0, 0, 1, 1], [], []>} : vector<8x64xbf16>, vector<64x32xbf16>, vector<8x32xf32> -> vector<8x32xf32>
    %c0_9 = arith.constant 0 : index
    %c0_10 = arith.constant 0 : index
    %11 = vector.load %arg5[%c0_9, %c0_10] : memref<1x32xf32, #tpu.memory_space<vmem>>, vector<1x32xf32>
    %12 = vector.broadcast %11 : vector<1x32xf32> to vector<8x32xf32>
    %13 = arith.addf %10, %12 : vector<8x32xf32>
    %cst_11 = arith.constant 0.000000e+00 : f32
    %14 = vector.broadcast %cst_11 : f32 to vector<8x32xf32>
    %15 = arith.maximumf %13, %14 : vector<8x32xf32>
    %16 = arith.truncf %15 : vector<8x32xf32> to vector<8x32xbf16>
    %c0_12 = arith.constant 0 : index
    %c0_13 = arith.constant 0 : index
    %17 = vector.load %arg6[%c0_12, %c0_13] : memref<32x16xbf16, #tpu.memory_space<vmem>>, vector<32x16xbf16>
    %cst_14 = arith.constant dense<0.000000e+00> : vector<8x16xf32>
    %18 = tpu.matmul %16, %17, %cst_14 {dimension_numbers = #tpu.dot_dimension_numbers<[1], [0], [0], [1], [0, 0, 1, 1], [], []>} : vector<8x32xbf16>, vector<32x16xbf16>, vector<8x16xf32> -> vector<8x16xf32>
    %c0_15 = arith.constant 0 : index
    %c0_16 = arith.constant 0 : index
    %19 = vector.load %arg7[%c0_15, %c0_16] : memref<1x16xf32, #tpu.memory_space<vmem>>, vector<1x16xf32>
    %20 = vector.broadcast %19 : vector<1x16xf32> to vector<8x16xf32>
    %21 = arith.addf %18, %20 : vector<8x16xf32>
    %cst_17 = arith.constant 0.000000e+00 : f32
    %22 = vector.broadcast %cst_17 : f32 to vector<8x16xf32>
    %23 = arith.maximumf %21, %22 : vector<8x16xf32>
    %24 = arith.truncf %23 : vector<8x16xf32> to vector<8x16xbf16>
    %c0_18 = arith.constant 0 : index
    %c0_19 = arith.constant 0 : index
    %25 = vector.load %arg8[%c0_18, %c0_19] : memref<1x16xbf16, #tpu.memory_space<vmem>>, vector<1x16xbf16>
    %cst_20 = arith.constant dense<0.000000e+00> : vector<1x8xf32>
    %26 = tpu.matmul %25, %24, %cst_20 {dimension_numbers = #tpu.dot_dimension_numbers<[1], [1], [0], [0], [0, 0, 1, 0], [], []>} : vector<1x16xbf16>, vector<8x16xbf16>, vector<1x8xf32> -> vector<1x8xf32>
    %c0_21 = arith.constant 0 : index
    %c0_22 = arith.constant 0 : index
    %27 = vector.load %arg9[%c0_21, %c0_22] : memref<1x1xf32, #tpu.memory_space<vmem>>, vector<1x1xf32>
    %28 = vector.broadcast %27 : vector<1x1xf32> to vector<1x8xf32>
    %29 = arith.addf %26, %28 : vector<1x8xf32>
    %c0_23 = arith.constant 0 : index
    %c0_24 = arith.constant 0 : index
    %30 = vector.load %arg10[%c0_23, %c0_24] : memref<1x8xf32, #tpu.memory_space<vmem>>, vector<1x8xf32>
    tpu.vector_store %arg10[%c0_23, %c0_24], %29 {strides = array<i32>} : memref<1x8xf32, #tpu.memory_space<vmem>>, vector<1x8xf32>,
    return
  }
  func.func @transform_0(%arg0: i32) -> (i32, i32) {
    %c0_i32 = arith.constant 0 : i32
    %c0_i32_0 = arith.constant 0 : i32
    return %arg0, %c0_i32 : i32, i32
  }
  func.func @transform_1(%arg0: i32) -> (i32, i32) {
    %c0_i32 = arith.constant 0 : i32
    %c0_i32_0 = arith.constant 0 : i32
    %c0_i32_1 = arith.constant 0 : i32
    return %c0_i32, %c0_i32_0 : i32, i32
  }
  func.func @transform_2(%arg0: i32) -> (i32, i32) {
    %c0_i32 = arith.constant 0 : i32
    %c0_i32_0 = arith.constant 0 : i32
    %c0_i32_1 = arith.constant 0 : i32
    return %c0_i32, %c0_i32_0 : i32, i32
  }
  func.func @transform_3(%arg0: i32) -> (i32, i32) {
    %c0_i32 = arith.constant 0 : i32
    %c0_i32_0 = arith.constant 0 : i32
    %c0_i32_1 = arith.constant 0 : i32
    return %c0_i32, %c0_i32_0 : i32, i32
  }
  func.func @transform_4(%arg0: i32) -> (i32, i32) {
    %c0_i32 = arith.constant 0 : i32
    %c0_i32_0 = arith.constant 0 : i32
    %c0_i32_1 = arith.constant 0 : i32
    return %c0_i32, %c0_i32_0 : i32, i32
  }
  func.func @transform_5(%arg0: i32) -> (i32, i32) {
    %c0_i32 = arith.constant 0 : i32
    %c0_i32_0 = arith.constant 0 : i32
    %c0_i32_1 = arith.constant 0 : i32
    return %c0_i32, %c0_i32_0 : i32, i32
  }
  func.func @transform_6(%arg0: i32) -> (i32, i32) {
    %c0_i32 = arith.constant 0 : i32
    %c0_i32_0 = arith.constant 0 : i32
    %c0_i32_1 = arith.constant 0 : i32
    return %c0_i32, %c0_i32_0 : i32, i32
  }
  func.func @transform_7(%arg0: i32) -> (i32, i32) {
    %c0_i32 = arith.constant 0 : i32
    %c0_i32_0 = arith.constant 0 : i32
    %c0_i32_1 = arith.constant 0 : i32
    return %c0_i32, %c0_i32_0 : i32, i32
  }
  func.func @transform_8(%arg0: i32) -> (i32, i32) {
    %c0_i32 = arith.constant 0 : i32
    %c0_i32_0 = arith.constant 0 : i32
    %c0_i32_1 = arith.constant 0 : i32
    return %c0_i32, %c0_i32_0 : i32, i32
  }
  func.func @transform_9(%arg0: i32) -> (i32, i32) {
    %c0_i32 = arith.constant 0 : i32
    %c0_i32_0 = arith.constant 0 : i32
    return %c0_i32, %arg0 : i32, i32
  }
}

</mosaic_0001>

<bundles_post_ra>
// kernel: tpu_custom_call.1
= control target key start
LH: loop header
LB: loop body
LE: loop exit
PB: predicated region body
PF: predicated region fallthrough
CT: control target
= control target key end

     0   :  { %s546_s0 = inlined_call_operand.vmem [shape: bf16[8,32], index: 0, kind: input, shape index: {}]   ;;  %s547_s1 = inlined_call_operand.vmem [shape: bf16[32,64], index: 1, kind: input, shape index: {}]   ;;  %s548_s2 = inlined_call_operand.vmem [shape: f32[1,64], index: 2, kind: input, shape index: {}]   ;;  %s549_s3 = inlined_call_operand.vmem [shape: bf16[64,32], index: 3, kind: input, shape index: {}]   ;;  %s550_s4 = inlined_call_operand.vmem [shape: f32[1,32], index: 4, kind: input, shape index: {}]   ;;  %s551_s5 = inlined_call_operand.vmem [shape: bf16[32,16], index: 5, kind: input, shape index: {}]   ;;  %s552_s6 = inlined_call_operand.vmem [shape: f32[1,16], index: 6, kind: input, shape index: {}]   ;;  %s553_s7 = inlined_call_operand.vmem [shape: bf16[1,16], index: 7, kind: input, shape index: {}]   ;;  %s554_s8 = inlined_call_operand.<no memory space> [shape: f32[1,1], index: 8, kind: input, shape index: {}]   ;;  %s555_s9 = inlined_call_operand.hbm [shape: f32[1,8], index: 9, kind: output, shape index: {}]  }
   0x1   :  { %v14_v0 = vstv %s554_s8 }
   0x2   :  { %15 = vst [vmem:[#allocation2] sm:$0x1] %v14_v0 }
   0x3   :  { %v400_v1 = vld [vmem:[%s547_s1] sm:$0xff]   ;;  %v432_v2 = vmov 0.0   ;;  %v401_v3 = vld [vmem:[%s547_s1 + $0x8] sm:$0xff]   ;;  %vm433_vm0 = vmmov 0   ;;  %vm60_vm1 = vcmask 261120  }
   0x4   :  { %361 = vmatprep.subr.bf16.mxu0 %v432_v2  ;;  %369 = vmatprep.subr.bf16.mxu1 %v432_v2  ;;  %v402_v4 = vld [vmem:[%s549_s3] sm:$0xff]   ;;  %v403_v6 = vld [vmem:[%s549_s3 + $0x8] sm:$0xff]  }
   0x5   :  { %362 = vmatpush3.bf16.msra.mxu0 %v400_v1  ;;  %365 = vmatprep.mubr.msk.bf16.mxu0 %vm433_vm0, %v432_v2  ;;  %v36_v5 = vld [vmem:[%s546_s0] sm:$0xf] }
   0x6   :  { %363 = vmatprep.subr.bf16.mxu0 %v432_v2  ;;  %377 = vmatprep.mubr.msk.bf16.mxu1 %vm433_vm0, %v432_v2 }
   0x7   :  { %370 = vmatpush3.bf16.msra.mxu1 %v402_v4 }
   0x8   :  { %371 = vmatprep.subr.bf16.mxu1 %v432_v2 }
   0x9   :  { %364 = vmatpush3.bf16.msra.mxu0 %v401_v3 }
   0xa   :  { %381 = vmatprep.subr.bf16.mxu0 %v432_v2 }
   0xb   :  { %16 = vsyncpa [#allocation4], 0  ;;  %372 = vmatpush3.bf16.msra.mxu1 %v403_v6  ;;  %v404_v7 = vld [vmem:[%s549_s3 + $0x10] sm:$0xff]   ;;  %v405_v8 = vld [vmem:[%s549_s3 + $0x18] sm:$0xff]   ;;  %vm145_vm2 = vcmask 523264   ;;  %v434_v28 = vmov 0   ;;  %v266_v39 = vlaneseq }
   0xc   :  { %366 = vmatmul.mubr.msk.bf16.vlgmr.msra.gmra.mrb[0].mxu0 %vm60_vm1, %v36_v5  ;;  %373 = vmatprep.subr.bf16.mxu1 %v432_v2  ;;  %v333_v9 = vld [vmem:[%s548_s2] ss:$0 sm:$0xff]  ;;  %v407_v18 = vld [vmem:[%s551_s5 + $0x8] sm:$0xff]   ;;  %vm270_vm3 = vcmask 130048   ;;  %vm317_vm4 = vcmask 57344  }
   0xd   :  { %385 = vmatprep.mubr.msk.bf16.mxu0 %vm433_vm0, %v432_v2  ;;  %v406_v17 = vld [vmem:[%s551_s5] sm:$0xff]   ;;  %399 = vset.pattern.permute.xlu0 %v434_v28  ;;  %v267_v40 = vshrl.u32 %v266_v39, 7 }
   0xe   :  { %382 = vmatpush3.bf16.msra.mxu0 %v406_v17  ;;  %v337_v19 = vld [vmem:[%s550_s4] ss:$0 sm:$0xff] }
   0xf   :  { %374 = vmatpush3.bf16.msra.mxu1 %v404_v7  ;;  %383 = vmatprep.subr.bf16.mxu0 %v432_v2  ;;  %v260_v27 = vld [vmem:[#allocation2] sm:$0x1]  ;;  %v268_v41 = vsub.s32 0, %v267_v40 }
  0x10   :  { %375 = vmatprep.subr.bf16.mxu1 %v432_v2  ;;  %263 = vperm.xlu0 %399, %v260_v27   ;;  %v343_v29 = vld [vmem:[%s552_s6] ss:$0 sm:$0xff]  ;;  %s435_s6 = smov [#allocation3]  }
  0x11   :  { %v259_v38 = vld [vmem:[%s553_s7] sm:$0x1]  ;;  %s325_s30 = sshll.u32 %s435_s6, 4  ;;  %s326_s30 = int_to_ptr.vmem [resolvable:$true] %s325_s30 }
  0x12   :  { %384 = vmatpush3.bf16.msra.mxu0 %v407_v18  ;;  %s408_s10 = scalar_lea.vmem %s326_s30, 16  ;;  %s412_s11 = scalar_lea.vmem %s326_s30, 32 }
  0x13   :  { %376 = vmatpush3.bf16.msra.mxu1 %v405_v8  ;;  %389 = vmatprep.subr.bf16.mxu0 %v432_v2  ;;  %p409_p0 = scmp.ne.s32.totalorder %s326_s30, %s408_s10  ;;  %p413_p1 = scmp.lt.s32.totalorder %s326_s30, %s326_s30 }
  0x14   :  { %p414_p2 = scmp.lt.s32.totalorder %s412_s11, %s408_s10 }
  0x16   :  { %p415_p3 = por %p414_p2, %p413_p1 }
  0x18   :  { %p416_p4 = pnand %p415_p3, %p409_p0 }
  0x8f   :  { %v264_v42 = vpop.permute.xlu0 %263 }
  0x90   :  { %v269_v43 = vrot.slane %v264_v42, %v268_v41 }
  0xdf   :  { %v98_v10 = vpop.f32.mrb[0].mxu0 }
  0xe0   :  { %v99_v11 = vadd.f32 %v333_v9, %v98_v10  ;;  %v367_v12 = vpop.f32.mrb[1].mxu0 }
  0xe1   :  { %v101_v13 = vpop.f32.mrb[2].mxu0 }
  0xe2   :  { %v104_v14 = vmax.f32 %v99_v11, 0.0  ;;  %v368_v15 = vpop.f32.mrb[3].mxu0 }
  0xe4   :  { %v105_v16 = vpack.c.bf16 %v104_v14, %v104_v14 }
  0xe6   :  { %378 = vmatmul.mubr.msk.bf16.vlgmr.msra.gmra.mrb[0].mxu1 %vm145_vm2, %v105_v16 }
 0x1b9   :  { %v183_v20 = vpop.f32.mrb[0].mxu1 }
 0x1ba   :  { %v184_v21 = vadd.f32 %v337_v19, %v183_v20  ;;  %v379_v22 = vpop.f32.mrb[1].mxu1 }
 0x1bb   :  { %v186_v23 = vpop.f32.mrb[2].mxu1 }
 0x1bc   :  { %v189_v24 = vmax.f32 %v184_v21, 0.0  ;;  %v380_v25 = vpop.f32.mrb[3].mxu1 }
 0x1be   :  { %v190_v26 = vpack.c.bf16 %v189_v24, %v189_v24 }
 0x1c0   :  { %386 = vmatmul.mubr.msk.bf16.vlgmr.msra.gmra.mrb[4].mxu0 %vm60_vm1, %v190_v26 }
 0x1c1   :  { %391 = vmatprep.mubr.msk.bf16.mxu0 %vm433_vm0, %v432_v2 }
 0x293   :  { %v251_v30 = vpop.f32.mrb[4].mxu0 }
 0x294   :  { %v252_v31 = vadd.f32 %v343_v29, %v251_v30  ;;  %v387_v32 = vpop.f32.mrb[5].mxu0 }
 0x295   :  { %v254_v33 = vpop.f32.mrb[6].mxu0 }
 0x296   :  { %v257_v34 = vmax.f32 %v252_v31, 0.0  ;;  %v388_v35 = vpop.f32.mrb[7].mxu0 }
 0x298   :  { %v258_v36 = vpack.c.bf16 %v257_v34, %v257_v34 }
 0x29a   :  { %v275_v37 = vsel %vm270_vm3, %v258_v36, 0 }
 0x29b   :  { %390 = vmatpush3.bf16.xpose.msra.mxu0 %v275_v37 }
 0x2a2   :  { %392 = vmatmul.mubr.msk.bf16.vlgmr.msra.gmra.mrb[8].mxu0 %vm270_vm3, %v259_v38 }
 0x375   :  { %v311_v44 = vpop.f32.mrb[8].mxu0 }
 0x376   :  { %v312_v45 = vadd.f32 %v311_v44, %v269_v43  ;;  %v393_v46 = vpop.f32.mrb[9].mxu0 }
 0x377   :  { %v314_v47 = vpop.f32.mrb[10].mxu0 }
 0x378   :  { %v394_v48 = vpop.f32.mrb[11].mxu0  ;;  %318 = vst.msk [vmem:[#allocation3] sm:$0x1] %vm317_vm4, %v312_v45 }
 0x379   :  { %419 = shalt.err (!%p416_p4)
}
 0x37a   :  { %s420_s13 = scalar_lea.hbm %s555_s9, 16 }
 0x37b   :  { %p421_p5 = scmp.ne.s32.totalorder %s555_s9, %s420_s13  ;;  %p424_p6 = scmp.lt.u32.totalorder %s420_s13, %s555_s9 }
 0x37d   :  { %p426_p7 = pnand %p424_p6, %p421_p5 }
 0x37f   :  { %429 = shalt.err (!%p426_p7)
}
 0x380   :  { %328 = dma.vmem_to_hbm [thread:$0]  %s326_s30, 16, %s555_s9, [#allocation4]  }
 0x381   :  { %430 = dma.done.wait [#allocation4], 16  }
 0x382   :  { %431 = vsyncadd [#allocation4], 4294967280 }
 0x383   :  { %332 = vsyncpa [#allocation4], 1 }

</bundles_post_ra>
